<compile_context>
chip_gen: v7x
topology: tpu7x:2x2x1
jax: 0.10.0
libtpu: 0.0.40
codegen_flags: <defaults>
</compile_context>

<pallas_src>
import functools

import jax
import jax.numpy as jnp
from jax.experimental import pallas as pl
from jax.experimental.pallas import tpu as pltpu


def _regressor_kernel(x_ref, w1_ref, b1_ref, gamma_ref, beta_ref,
                      w2row_ref, b2_ref, o_ref):
    # ---- linear1 on the MXU: bf16 inputs, f32 accumulation ----
    xb = x_ref[...].astype(jnp.bfloat16)
    h = jnp.dot(xb, w1_ref[...], preferred_element_type=jnp.float32)
    h = h + b1_ref[...]

    # ---- LeakyReLU (default negative_slope = 0.01) ----
    h = jnp.where(h > 0, h, 0.01 * h)

    # ---- Dropout(p=0.5): identity in eval mode ----
    # TODO(synk): training-mode dropout (stochastic mask + 1/(1-p) scale) not emitted.

    # ---- LayerNorm over last dim, eps=1e-6, f32 math ----
    mean = jnp.mean(h, axis=-1, keepdims=True)
    c = h - mean
    var = jnp.mean(c * c, axis=-1, keepdims=True)
    hn = c * jax.lax.rsqrt(var + 1e-6)
    hn = hn * gamma_ref[...] + beta_ref[...]

    # ---- linear2 (H -> 1) as VPU mul + lane reduce (not a 1-column MXU matmul) ----
    w2r = w2row_ref[...].astype(jnp.float32)                 # (1, H)
    y = jnp.sum(hn * w2r, axis=-1, keepdims=True) + b2_ref[0]

    # ---- Sigmoid ----
    o_ref[...] = jax.nn.sigmoid(y).astype(o_ref.dtype)


def _pick_block_b(batch):
    # Big batch tiles keep the MXU fed and amortize the ~0.35us/step grid
    # overhead; cap at ~B//2 so the parallel grid has >=2 steps (both v7x TCs),
    # and never go below the 8-sublane minimum.
    blk = min(256, pl.next_power_of_2(max(batch // 2, 1)))
    return max(8, blk)


@functools.partial(jax.jit, static_argnames=("block_b",))
def regressor_head(x, w1, b1, gamma, beta, w2, b2, *, block_b=None):
    B, D = x.shape
    H = w1.shape[1]
    assert w2.shape == (H, 1), "kernel specializes the output_dim=1 head"

    if block_b is None:
        block_b = _pick_block_b(B)
    n_blocks = pl.cdiv(B, block_b)
    B_pad = n_blocks * block_b
    if B_pad != B:
        # Pad batch; padded rows are computed but sliced off below.
        x = jnp.pad(x, ((0, B_pad - B), (0, 0)))

    b1 = b1.reshape(1, H).astype(jnp.float32)
    gamma = gamma.reshape(1, H).astype(jnp.float32)
    beta = beta.reshape(1, H).astype(jnp.float32)
    w2_row = w2.reshape(1, H)                 # broadcast row for the VPU reduce
    b2_s = b2.reshape(1).astype(jnp.float32)  # SMEM scalar

    # VMEM budget guard: x/out tiles + resident params, double-buffered.
    isx = jnp.dtype(x.dtype).itemsize
    isw = jnp.dtype(w1.dtype).itemsize
    vmem_est = (2 * block_b * (D * isx + isx)
                + 2 * (D * H * isw + H * isw + 3 * H * 4))
    cp_kwargs = dict(dimension_semantics=("parallel",))
    if vmem_est > 12 * 1024 * 1024:
        # Raise the scoped-VMEM limit, staying well under v7x's 64 MiB physical
        # VMEM.  For D*H too large even for this, w1 must be K-tiled over D
        # (extra "arbitrary" grid axis + f32 acc scratch with pl.when init).
        cp_kwargs["vmem_limit_bytes"] = min(int(vmem_est * 2), 56 * 1024 * 1024)
    compiler_params = pltpu.CompilerParams(**cp_kwargs)

    out = pl.pallas_call(
        _regressor_kernel,
        out_shape=jax.ShapeDtypeStruct((B_pad, 1), x.dtype),
        grid=(n_blocks,),
        in_specs=[
            pl.BlockSpec((block_b, D), lambda i: (i, 0)),     # x tile
            pl.BlockSpec((D, H), lambda i: (0, 0)),           # w1 (resident, bf16)
            pl.BlockSpec((1, H), lambda i: (0, 0)),           # b1
            pl.BlockSpec((1, H), lambda i: (0, 0)),           # LN gamma
            pl.BlockSpec((1, H), lambda i: (0, 0)),           # LN beta
            pl.BlockSpec((1, H), lambda i: (0, 0)),           # w2 row
            pl.BlockSpec(memory_space=pltpu.MemorySpace.SMEM),  # b2 scalar
        ],
        out_specs=pl.BlockSpec((block_b, 1), lambda i: (i, 0)),
        compiler_params=compiler_params,
    )(x, w1, b1, gamma, beta, w2_row, b2_s)

    return out[:B]


def _kaiming_uniform(key, fan_in, shape, dtype=jnp.float32):
    # matches torch.nn.init.kaiming_uniform_ with a=0 (sqrt(6/fan_in) bound)
    bound = jnp.sqrt(6.0 / fan_in)
    return jax.random.uniform(key, shape, dtype, minval=-bound, maxval=bound)


if __name__ == "__main__":
    # Small shapes consistent with the module (input_dim -> input_dim//2 -> 1).
    # B=20 exercises wrapper-side padding and a multi-step grid.
    B, D = 20, 256
    H = D // 2          # 128
    OUT = 1

    key = jax.random.PRNGKey(0)
    kx, kw1, kw2, kb1, kb2, kg, kbt = jax.random.split(key, 7)

    x = jax.random.normal(kx, (B, D), jnp.float32)

    # Parameters (weights stored as (in, out)); matmul weights in bf16.
    w1 = _kaiming_uniform(kw1, D, (D, H)).astype(jnp.bfloat16)
    b1 = 0.1 * jax.random.normal(kb1, (H,), jnp.float32)
    gamma = 1.0 + 0.1 * jax.random.normal(kg, (H,), jnp.float32)
    beta = 0.1 * jax.random.normal(kbt, (H,), jnp.float32)
    w2 = _kaiming_uniform(kw2, H, (H, OUT))
    b2 = 0.1 * jax.random.normal(kb2, (OUT,), jnp.float32)

    out = regressor_head(x, w1, b1, gamma, beta, w2, b2)
    jax.block_until_ready(out)

    # Pure-JAX reference mirroring the kernel numerics (bf16 matmul inputs,
    # f32 accumulation and elementwise math).
    h = jnp.dot(x.astype(jnp.bfloat16), w1,
                preferred_element_type=jnp.float32) + b1[None, :]
    h = jnp.where(h > 0, h, 0.01 * h)
    mu = jnp.mean(h, axis=-1, keepdims=True)
    va = jnp.mean((h - mu) ** 2, axis=-1, keepdims=True)
    hn = (h - mu) * jax.lax.rsqrt(va + 1e-6) * gamma[None, :] + beta[None, :]
    ref = jax.nn.sigmoid(hn @ w2 + b2[None, :])

    assert out.shape == (B, OUT)
    assert jnp.allclose(out, ref, atol=1e-3, rtol=1e-3), "mismatch vs reference"

    print("KERNEL_OK")
</pallas_src>

<mosaic_0001>
module attributes {stable_mosaic.version = 11 : i64} {
  func.func @_regressor_kernel(%arg0: i32, %arg1: memref<16x256xf32, #tpu.memory_space<vmem>>, %arg2: memref<256x128xbf16, #tpu.memory_space<vmem>>, %arg3: memref<1x128xf32, #tpu.memory_space<vmem>>, %arg4: memref<1x128xf32, #tpu.memory_space<vmem>>, %arg5: memref<1x128xf32, #tpu.memory_space<vmem>>, %arg6: memref<1x128xf32, #tpu.memory_space<vmem>>, %arg7: memref<1xf32, #tpu.memory_space<smem>>, %arg8: memref<16x1xf32, #tpu.memory_space<vmem>>) attributes {dimension_semantics = [#tpu.dimension_semantics<parallel>], iteration_bounds = array<i64: 2>, scalar_prefetch = 0 : i64, scratch_operands = 0 : i64, tpu.core_type = #tpu.core_type<tc>, window_params = [{transform_indices = @transform_0, window_bounds = array<i64: 16, 256>}, {pipeline_mode = #tpu.pipeline_mode<synchronous>, transform_indices = @transform_1, window_bounds = array<i64: 256, 128>}, {pipeline_mode = #tpu.pipeline_mode<synchronous>, transform_indices = @transform_2, window_bounds = array<i64: 1, 128>}, {pipeline_mode = #tpu.pipeline_mode<synchronous>, transform_indices = @transform_3, window_bounds = array<i64: 1, 128>}, {pipeline_mode = #tpu.pipeline_mode<synchronous>, transform_indices = @transform_4, window_bounds = array<i64: 1, 128>}, {pipeline_mode = #tpu.pipeline_mode<synchronous>, transform_indices = @transform_5, window_bounds = array<i64: 1, 128>}, {transform_indices = @transform_6, window_bounds = array<i64: 1>}, {transform_indices = @transform_7, window_bounds = array<i64: 16, 1>}]} {
    %c0 = arith.constant 0 : index
    %c0_0 = arith.constant 0 : index
    %0 = vector.load %arg1[%c0, %c0_0] : memref<16x256xf32, #tpu.memory_space<vmem>>, vector<16x256xf32>
    %1 = arith.truncf %0 : vector<16x256xf32> to vector<16x256xbf16>
    %c0_1 = arith.constant 0 : index
    %c0_2 = arith.constant 0 : index
    %2 = vector.load %arg2[%c0_1, %c0_2] : memref<256x128xbf16, #tpu.memory_space<vmem>>, vector<256x128xbf16>
    %cst = arith.constant dense<0.000000e+00> : vector<16x128xf32>
    %3 = tpu.matmul %1, %2, %cst {dimension_numbers = #tpu.dot_dimension_numbers<[1], [0], [0], [1], [0, 0, 1, 1], [], []>} : vector<16x256xbf16>, vector<256x128xbf16>, vector<16x128xf32> -> vector<16x128xf32>
    %c0_3 = arith.constant 0 : index
    %c0_4 = arith.constant 0 : index
    %4 = vector.load %arg3[%c0_3, %c0_4] : memref<1x128xf32, #tpu.memory_space<vmem>>, vector<1x128xf32>
    %5 = vector.broadcast %4 : vector<1x128xf32> to vector<16x128xf32>
    %6 = arith.addf %3, %5 : vector<16x128xf32>
    %cst_5 = arith.constant 0.000000e+00 : f32
    %7 = vector.broadcast %cst_5 : f32 to vector<16x128xf32>
    %8 = arith.cmpf ogt, %6, %7 : vector<16x128xf32>
    %cst_6 = arith.constant 0.00999999977 : f32
    %9 = vector.broadcast %cst_6 : f32 to vector<16x128xf32>
    %10 = arith.mulf %9, %6 : vector<16x128xf32>
    %11 = arith.select %8, %6, %10 : vector<16x128xi1>, vector<16x128xf32>
    %cst_7 = arith.constant dense<0.000000e+00> : vector<16xf32>
    %12 = vector.multi_reduction <add>, %11, %cst_7 [1] : vector<16x128xf32> to vector<16xf32>
    %13 = vector.shape_cast %12 : vector<16xf32> to vector<16x1xf32>
    %cst_8 = arith.constant 1.280000e+02 : f32
    %14 = vector.broadcast %cst_8 : f32 to vector<16x1xf32>
    %15 = arith.divf %13, %14 : vector<16x1xf32>
    %16 = vector.broadcast %15 : vector<16x1xf32> to vector<16x128xf32>
    %17 = arith.subf %11, %16 : vector<16x128xf32>
    %18 = arith.mulf %17, %17 : vector<16x128xf32>
    %cst_9 = arith.constant dense<0.000000e+00> : vector<16xf32>
    %19 = vector.multi_reduction <add>, %18, %cst_9 [1] : vector<16x128xf32> to vector<16xf32>
    %20 = vector.shape_cast %19 : vector<16xf32> to vector<16x1xf32>
    %cst_10 = arith.constant 1.280000e+02 : f32
    %21 = vector.broadcast %cst_10 : f32 to vector<16x1xf32>
    %22 = arith.divf %20, %21 : vector<16x1xf32>
    %cst_11 = arith.constant 9.99999997E-7 : f32
    %23 = vector.broadcast %cst_11 : f32 to vector<16x1xf32>
    %24 = arith.addf %22, %23 : vector<16x1xf32>
    %25 = math.rsqrt %24 : vector<16x1xf32>
    %26 = vector.broadcast %25 : vector<16x1xf32> to vector<16x128xf32>
    %27 = arith.mulf %17, %26 : vector<16x128xf32>
    %c0_12 = arith.constant 0 : index
    %c0_13 = arith.constant 0 : index
    %28 = vector.load %arg4[%c0_12, %c0_13] : memref<1x128xf32, #tpu.memory_space<vmem>>, vector<1x128xf32>
    %29 = vector.broadcast %28 : vector<1x128xf32> to vector<16x128xf32>
    %30 = arith.mulf %27, %29 : vector<16x128xf32>
    %c0_14 = arith.constant 0 : index
    %c0_15 = arith.constant 0 : index
    %31 = vector.load %arg5[%c0_14, %c0_15] : memref<1x128xf32, #tpu.memory_space<vmem>>, vector<1x128xf32>
    %32 = vector.broadcast %31 : vector<1x128xf32> to vector<16x128xf32>
    %33 = arith.addf %30, %32 : vector<16x128xf32>
    %c0_16 = arith.constant 0 : index
    %c0_17 = arith.constant 0 : index
    %34 = vector.load %arg6[%c0_16, %c0_17] : memref<1x128xf32, #tpu.memory_space<vmem>>, vector<1x128xf32>
    %35 = vector.broadcast %34 : vector<1x128xf32> to vector<16x128xf32>
    %36 = arith.mulf %33, %35 : vector<16x128xf32>
    %cst_18 = arith.constant dense<0.000000e+00> : vector<16xf32>
    %37 = vector.multi_reduction <add>, %36, %cst_18 [1] : vector<16x128xf32> to vector<16xf32>
    %38 = vector.shape_cast %37 : vector<16xf32> to vector<16x1xf32>
    %c0_19 = arith.constant 0 : index
    %39 = memref.load %arg7[%c0_19] : memref<1xf32, #tpu.memory_space<smem>>
    %40 = vector.broadcast %39 : f32 to vector<16x1xf32>
    %41 = arith.addf %38, %40 : vector<16x1xf32>
    %42 = arith.negf %41 : vector<16x1xf32>
    %43 = math.exp %42 : vector<16x1xf32>
    %cst_20 = arith.constant 1.000000e+00 : f32
    %44 = vector.broadcast %cst_20 : f32 to vector<16x1xf32>
    %45 = arith.addf %44, %43 : vector<16x1xf32>
    %46 = arith.divf %44, %45 : vector<16x1xf32>
    %c0_21 = arith.constant 0 : index
    %c0_22 = arith.constant 0 : index
    %47 = vector.load %arg8[%c0_21, %c0_22] : memref<16x1xf32, #tpu.memory_space<vmem>>, vector<16x1xf32>
    tpu.vector_store %arg8[%c0_21, %c0_22], %46 {strides = array<i32>} : memref<16x1xf32, #tpu.memory_space<vmem>>, vector<16x1xf32>,
    return
  }
  func.func @transform_0(%arg0: i32) -> (i32, i32) {
    %c0_i32 = arith.constant 0 : i32
    %c0_i32_0 = arith.constant 0 : i32
    return %arg0, %c0_i32 : i32, i32
  }
  func.func @transform_1(%arg0: i32) -> (i32, i32) {
    %c0_i32 = arith.constant 0 : i32
    %c0_i32_0 = arith.constant 0 : i32
    %c0_i32_1 = arith.constant 0 : i32
    return %c0_i32, %c0_i32_0 : i32, i32
  }
  func.func @transform_2(%arg0: i32) -> (i32, i32) {
    %c0_i32 = arith.constant 0 : i32
    %c0_i32_0 = arith.constant 0 : i32
    %c0_i32_1 = arith.constant 0 : i32
    return %c0_i32, %c0_i32_0 : i32, i32
  }
  func.func @transform_3(%arg0: i32) -> (i32, i32) {
    %c0_i32 = arith.constant 0 : i32
    %c0_i32_0 = arith.constant 0 : i32
    %c0_i32_1 = arith.constant 0 : i32
    return %c0_i32, %c0_i32_0 : i32, i32
  }
  func.func @transform_4(%arg0: i32) -> (i32, i32) {
    %c0_i32 = arith.constant 0 : i32
    %c0_i32_0 = arith.constant 0 : i32
    %c0_i32_1 = arith.constant 0 : i32
    return %c0_i32, %c0_i32_0 : i32, i32
  }
  func.func @transform_5(%arg0: i32) -> (i32, i32) {
    %c0_i32 = arith.constant 0 : i32
    %c0_i32_0 = arith.constant 0 : i32
    %c0_i32_1 = arith.constant 0 : i32
    return %c0_i32, %c0_i32_0 : i32, i32
  }
  func.func @transform_6(%arg0: i32) -> i32 {
    %c0_i32 = arith.constant 0 : i32
    %c0_i32_0 = arith.constant 0 : i32
    return %c0_i32 : i32
  }
  func.func @transform_7(%arg0: i32) -> (i32, i32) {
    %c0_i32 = arith.constant 0 : i32
    %c0_i32_0 = arith.constant 0 : i32
    return %arg0, %c0_i32 : i32, i32
  }
}

</mosaic_0001>

<bundles_post_ra>
// kernel: regressor_head.1
= control target key start
LH: loop header
LB: loop body
LE: loop exit
PB: predicated region body
PF: predicated region fallthrough
CT: control target
= control target key end

     0   :  { %s748_s26 = smov 0   ;;  %s829_s0 = inlined_call_operand.vmem [shape: f32[32,256], index: 0, kind: input, shape index: {}]   ;;  %s830_s1 = inlined_call_operand.vmem [shape: bf16[256,128], index: 1, kind: input, shape index: {}]   ;;  %s831_s2 = inlined_call_operand.vmem [shape: f32[1,128], index: 2, kind: input, shape index: {}]   ;;  %s832_s3 = inlined_call_operand.vmem [shape: f32[1,128], index: 3, kind: input, shape index: {}]   ;;  %s833_s4 = inlined_call_operand.vmem [shape: f32[1,128], index: 4, kind: input, shape index: {}]   ;;  %s834_s5 = inlined_call_operand.vmem [shape: f32[1,128], index: 5, kind: input, shape index: {}]   ;;  %s835_s6 = inlined_call_operand.<no memory space> [shape: f32[1], index: 6, kind: input, shape index: {}]   ;;  %s836_s7 = inlined_call_operand.vmem [shape: f32[32,1], index: 7, kind: output, shape index: {}]  }
   0x1   :  { %12 = sst [smem:[#allocation2]] %s835_s6 }
   0x2 LB: > { %s604_s27 = sadd.s32 4294967295, %s703_s26   ;;  %p608_p0 = scmp.ge.s32.totalorder %s703_s26, 1  ;;  %s703_s26 = sphi %s748_s26, %s18_s26  }
   0x3   : > { %p240_p1 = scmp.lt.s32.totalorder %s703_s26, 3 }
   0x5   : > { %p241_p2 = pnand %p608_p0, %p240_p1 }
   0x6   : > { %v669_v0 = vld [vmem:[%s830_s1 + $0x40] sm:$0xff] (!%p241_p2)   ;;  %s609_s6 = sshll.u32 (!%p241_p2), %s604_s27, 1  ;;  %v671_v2 = vld [vmem:[%s830_s1 + $0x48] sm:$0xff] (!%p241_p2)   ;;  %v673_v4 = vld [vmem:[%s830_s1 + $0x50] sm:$0xff] (!%p241_p2)   ;;  %s529_s28 = sld [smem:[#allocation2]] (!%p241_p2)  ;;  %vm545_vm2 = vcmask (!%p241_p2), 7168  }
   0x7   : > { %244 = sbr.rel (%p241_p2) target bundleno = 747 (0x2eb), region = 48  ;;  %v670_v1 = vld [vmem:[%s830_s1] sm:$0xff] (!%p241_p2)   ;;  %639 = vmatprep.subr.bf16.mxu0 (!%p241_p2), %v669_v0  ;;  %p274_p3 = scmp.lt.s32.totalorder (!%p241_p2), %s609_s6, 3  ;;  %v672_v3 = vld [vmem:[%s830_s1 + $0x8] sm:$0xff] (!%p241_p2)   ;;  %v674_v5 = vld [vmem:[%s830_s1 + $0x10] sm:$0xff] (!%p241_p2)  }
   0x8   : > { %640 = vmatpush3.bf16.msra.mxu0 (!%p241_p2), %v670_v1  ;;  %v675_v6 = vld [vmem:[%s830_s1 + $0x58] sm:$0xff] (!%p241_p2)   ;;  %v677_v8 = vld [vmem:[%s830_s1 + $0x60] sm:$0xff] (!%p241_p2)   ;;  %v679_v10 = vld [vmem:[%s830_s1 + $0x68] sm:$0xff] (!%p241_p2)  }
   0x9   : > { %641 = vmatprep.subr.bf16.mxu0 (!%p241_p2), %v671_v2  ;;  %v676_v7 = vld [vmem:[%s830_s1 + $0x18] sm:$0xff] (!%p241_p2)   ;;  %v678_v9 = vld [vmem:[%s830_s1 + $0x20] sm:$0xff] (!%p241_p2)   ;;  %v680_v14 = vld [vmem:[%s830_s1 + $0x28] sm:$0xff] (!%p241_p2)  }
   0xa   : > { %v681_v15 = vld [vmem:[%s830_s1 + $0x70] sm:$0xff] (!%p241_p2)   ;;  %v683_v17 = vld [vmem:[%s830_s1 + $0x78] sm:$0xff] (!%p241_p2)   ;;  %v614_v23 = vld [vmem:[%s831_s2] ss:$0 sm:$0xff] (!%p241_p2) }
   0xb   : > { %v682_v16 = vld [vmem:[%s830_s1 + $0x30] sm:$0xff] (!%p241_p2)   ;;  %v684_v18 = vld [vmem:[%s830_s1 + $0x38] sm:$0xff] (!%p241_p2)   ;;  %v631_v50 = vld [vmem:[%s832_s3] ss:$0 sm:$0xff] (!%p241_p2) }
   0xc   : > { %642 = vmatpush3.bf16.msra.mxu0 (!%p241_p2), %v672_v3  ;;  %v632_v52 = vld [vmem:[%s833_s4] ss:$0 sm:$0xff] (!%p241_p2)  ;;  %v530_v62 = vstv (!%p241_p2), %s529_s28 }
   0xd   : > { %643 = vmatprep.subr.bf16.mxu0 (!%p241_p2), %v673_v4  ;;  %v633_v55 = vld [vmem:[%s834_s5] ss:$0 sm:$0xff] (!%p241_p2) }
   0xe   : > { %s838_s6 = smov (!%p274_p3, %s609_s6), 3 }
   0xf   : > { %s638_s19 = sshll.u32 %s838_s6, 4  ;;  %s613_s29 = sshll.u32 %s838_s6, 3 }
  0x10   : > { %644 = vmatpush3.bf16.msra.mxu0 %v674_v5  ;;  %s278_s27 = scalar_lea.vmem %s829_s0, %s638_s19  ;;  %s284_s9 = scalar_lea.vmem %s836_s7, %s613_s29 }
  0x11   : > { %645 = vmatprep.subr.bf16.mxu0 %v675_v6  ;;  %v288_v11 = vld [vmem:[%s278_s27 + $0x8] sm:$0xff]  ;;  %v290_v12 = vld [vmem:[%s278_s27 + $0x18] sm:$0xff]  ;;  %v287_v19 = vld [vmem:[%s278_s27] sm:$0xff] }
  0x12   : > { %v292_v13 = vpack.c.bf16 %v290_v12, %v288_v11  ;;  %v289_v20 = vld [vmem:[%s278_s27 + $0x10] sm:$0xff] }
  0x13   : > { %v291_v21 = vpack.c.bf16 %v289_v20, %v287_v19 }
  0x14   : > { %646 = vmatpush3.bf16.msra.mxu0 %v676_v7  ;;  %460 = vmatprep.mubr.bf16.mxu0 %v292_v13 }
  0x15   : > { %647 = vmatprep.subr.bf16.mxu0 %v677_v8 }
  0x18   : > { %648 = vmatpush3.bf16.msra.mxu0 %v678_v9 }
  0x19   : > { %649 = vmatprep.subr.bf16.mxu0 %v679_v10 }
  0x1c   : > { %650 = vmatpush3.bf16.msra.mxu0 %v680_v14 }
  0x1d   : > { %651 = vmatprep.subr.bf16.mxu0 %v681_v15 }
  0x20   : > { %652 = vmatpush3.bf16.msra.mxu0 %v682_v16 }
  0x21   : > { %653 = vmatprep.subr.bf16.mxu0 %v683_v17 }
  0x24   : > { %654 = vmatpush3.bf16.msra.mxu0 %v684_v18 }
  0x27   : > { %461 = vmatmul.mubr.bf16.vlgmr.msra.gmra.mrb[0].mxu0 %v291_v21 }
  0xfa   : > { %v655_v22 = vpop.f32.mrb[0].mxu0 }
  0xfb   : > { %v656_v24 = vpop.f32.mrb[1].mxu0 }
  0xfc   : > { %v657_v25 = vadd.f32 %v656_v24, %v655_v22  ;;  %v658_v26 = vpop.f32.mrb[2].mxu0 }
  0xfd   : > { %v659_v27 = vpop.f32.mrb[3].mxu0 }
  0xfe   : > { %v463_v28 = vadd.f32 %v657_v25, %v614_v23  ;;  %v660_v29 = vadd.f32 %v659_v27, %v658_v26 }
 0x100   : > { %v466_v30 = vadd.f32 %v660_v29, %v614_v23  ;;  %vm469_vm0 = vcmp.gt.f32.partialorder %v463_v28, 0.0  ;;  %v471_v31 = vmul.f32 0.01, %v463_v28 }
 0x102   : > { %v473_v32 = vsel %vm469_vm0, %v463_v28, %v471_v31  ;;  %v472_v33 = vmul.f32 0.01, %v466_v30  ;;  %vm470_vm1 = vcmp.gt.f32.partialorder %v466_v30, 0.0 }
 0x103   : > { %475 = vadd.xlane.f32.xlu0 %v473_v32 }
 0x104   : > { %v474_v34 = vsel %vm470_vm1, %v466_v30, %v472_v33 }
 0x107   : > { %477 = vadd.xlane.f32.xlu0 %v474_v34 }
 0x190   : > { %v476_v35 = vpop.xlane.xlu0 %475 }
 0x191   : > { %v480_v36 = vmul.f32 0.0078125, %v476_v35 }
 0x193   : > { %v482_v37 = vsub.f32 %v473_v32, %v480_v36 }
 0x194   : > { %v478_v38 = vpop.xlane.xlu0 %477 }
 0x195   : > { %v481_v39 = vmul.f32 0.0078125, %v478_v38  ;;  %v484_v40 = vmul.f32 %v482_v37, %v482_v37 }
 0x197   : > { %v483_v41 = vsub.f32 %v474_v34, %v481_v39  ;;  %486 = vadd.xlane.f32.xlu1 %v484_v40 }
 0x199   : > { %v485_v42 = vmul.f32 %v483_v41, %v483_v41 }
 0x19b   : > { %488 = vadd.xlane.f32.xlu1 %v485_v42 }
 0x224   : > { %v487_v43 = vpop.xlane.xlu1 %486 }
 0x225   : > { %v490_v44 = vmul.f32 0.0078125, %v487_v43 }
 0x227   : > { %v492_v45 = vadd.f32 1e-06, %v490_v44 }
 0x228   : > { %v489_v46 = vpop.xlane.xlu1 %488 }
 0x229   : > { %685 = vrsqrt.f32 %v492_v45  ;;  %v491_v47 = vmul.f32 0.0078125, %v489_v46 }
 0x22b   : > { %v493_v48 = vadd.f32 1e-06, %v491_v47 }
 0x22d   : > { %687 = vrsqrt.f32 %v493_v48 }
 0x233   : > { %v686_v49 = vpop.eup %685 }
 0x234   : > { %v496_v51 = vmul.f32 %v686_v49, %v482_v37 }
 0x236   : > { %v505_v53 = vmul.f32 %v631_v50, %v496_v51 }
 0x237   : > { %v688_v54 = vpop.eup %687 }
 0x238   : > { %v514_v56 = vadd.f32 %v632_v52, %v505_v53  ;;  %v497_v57 = vmul.f32 %v688_v54, %v483_v41 }
 0x23a   : > { %v523_v58 = vmul.f32 %v633_v55, %v514_v56  ;;  %v506_v59 = vmul.f32 %v631_v50, %v497_v57 }
 0x23c   : > { %525 = vadd.xlane.f32.xlu0 %v523_v58  ;;  %v515_v60 = vadd.f32 %v632_v52, %v506_v59 }
 0x23e   : > { %v524_v61 = vmul.f32 %v633_v55, %v515_v60 }
 0x240   : > { %527 = vadd.xlane.f32.xlu1 %v524_v61 }
 0x2c9   : > { %v526_v63 = vpop.xlane.xlu0 %525 }
 0x2ca   : > { %v531_v0 = vadd.f32 %v530_v62, %v526_v63 }
 0x2cc   : > { %v634_v1 = vmul.f32 -1.442695, %v531_v0 }
 0x2cd   : > { %v528_v2 = vpop.xlane.xlu1 %527 }
 0x2ce   : > { %689 = vpow2.f32 %v634_v1  ;;  %v532_v3 = vadd.f32 %v530_v62, %v528_v2 }
 0x2d0   : > { %v635_v4 = vmul.f32 -1.442695, %v532_v3 }
 0x2d2   : > { %691 = vpow2.f32 %v635_v4 }
 0x2d8   : > { %v690_v5 = vpop.eup %689 }
 0x2d9   : > { %v539_v6 = vadd.f32 1.0, %v690_v5 }
 0x2db   : > { %693 = vrcp.f32 %v539_v6 }
 0x2dc   : > { %v692_v7 = vpop.eup %691 }
 0x2dd   : > { %v540_v8 = vadd.f32 1.0, %v692_v7 }
 0x2df   : > { %695 = vrcp.f32 %v540_v8 }
 0x2e5   : > { %v694_v9 = vpop.eup %693 }
 0x2e6   : > { %546 = vst.msk [vmem:[%s284_s9] sm:$0xff] %vm545_vm2, %v694_v9 }
 0x2e9   : > { %v696_v10 = vpop.eup %695 }
 0x2ea   : > { %547 = vst.msk [vmem:[%s284_s9 + $0x8] sm:$0xff] %vm545_vm2, %v696_v10 }
 0x2eb PF: > { %s18_s26 = sadd.s32 1, %s703_s26  }
 0x2ec   : > { %p15_p4 = scmp.ge.s32.totalorder %s18_s26, 4  }
 0x2ee   :  { %17 = sbr.rel (!%p15_p4) target bundleno = 2 (0x2), region = 78 }

</bundles_post_ra>
